<compile_context>
chip_gen: v7x
topology: tpu7x:2x2x1
jax: 0.10.0
libtpu: 0.0.40
codegen_flags: <defaults>
</compile_context>

<pallas_src>
import functools

import jax
import jax.numpy as jnp
from jax import lax
from jax.experimental import pallas as pl
from jax.experimental.pallas import tpu as pltpu


def _round_up(x, m):
    return ((x + m - 1) // m) * m


def v_network_kernel(obs_t_ref, w1t_ref, b1_ref, w2t_ref, b2_ref, w3c_ref,
                     b3_ref, out_ref, *, use_bf16):
    x = obs_t_ref[...]                      # (obs_dim, TILE_B)  batch on lanes
    w1t = w1t_ref[...]                      # (H, obs_dim)
    obs_dim = x.shape[0]

    # --- Layer 1 on the VPU: tiny-K contraction as an unrolled outer-product
    # accumulation (obs_dim is static, so this Python loop fully unrolls).
    acc = b1_ref[...]                       # (H, 1) -> broadcasts over lanes
    for k in range(obs_dim):
        acc = acc + w1t[:, k:k + 1] * x[k:k + 1, :]

    if use_bf16:
        # bf16 tanh (EUP is the binding slot on v6e/v7x) + bf16 MXU operands.
        h1 = jnp.tanh(acc.astype(jnp.bfloat16))                  # (H, TILE_B)
        z2 = jnp.dot(w2t_ref[...].astype(jnp.bfloat16), h1,
                     preferred_element_type=jnp.float32) + b2_ref[...]
        h2 = jnp.tanh(z2.astype(jnp.bfloat16)).astype(jnp.float32)
    else:
        # f32 path (v5e / accuracy-sensitive). Precision pinned so the result
        # does not depend on the ambient jax.default_matmul_precision.
        h1 = jnp.tanh(acc)                                       # (H, TILE_B)
        z2 = jnp.dot(w2t_ref[...], h1,
                     preferred_element_type=jnp.float32,
                     precision=lax.Precision.HIGHEST) + b2_ref[...]
        h2 = jnp.tanh(z2)                                        # (H, TILE_B)

    # --- Layer 3 off the MXU: VPU multiply + sublane reduce (XLU).
    out_ref[...] = (
        jnp.sum(h2 * w3c_ref[...], axis=0, keepdims=True)
        + b3_ref[...])                      # (1, TILE_B) lane-dense store


def _choose_tile(B, tile_b):
    """Lane-aligned batch tile: big enough to amortize grid-step overhead,
    small enough that a v7x megacore grid keeps >= 2 programs when B allows."""
    lane_b = _round_up(B, 128)
    tile = min(tile_b, lane_b)
    if lane_b > 128:
        # Keep at least 2 grid programs so ("parallel",) can shard across TCs.
        tile = min(tile, _round_up(pl.cdiv(B, 2), 128))
    tile = max(tile, 128)
    b_pad = _round_up(B, tile)
    return tile, b_pad


def v_network_forward(obs, params, tile_b=1024, use_bf16=False):
    """obs: (B, obs_dim) float32. params: dict of w1,b1,w2,b2,w3,b3 with W_k
    stored (in_features, out_features) and b_k stored (1, out_features)."""
    B, obs_dim = obs.shape
    H = params["w1"].shape[1]

    tile, b_pad = _choose_tile(B, tile_b)

    # Feature-major (obs_dim, b_pad) layout; jnp.pad lets XLA fuse the
    # transpose/pad instead of a separate zeros+scatter dispatch.
    # TODO(synk): accept obs feature-major upstream to drop this entirely.
    obs_t = jnp.pad(obs.T, ((0, 0), (0, b_pad - B)))

    w1t = params["w1"].T                    # (H, obs_dim)
    b1c = params["b1"].reshape(1, H).T      # (H, 1)
    w2t = params["w2"].T                    # (H, H)
    b2c = params["b2"].reshape(1, H).T      # (H, 1)
    w3c = params["w3"].reshape(H, 1)        # (H, 1)
    b3 = params["b3"].reshape(1, 1)         # (1, 1)

    # Constant (grid-invariant) operands: full blocks, index_map always 0.
    full = lambda a: pl.BlockSpec(a.shape, lambda i: tuple(0 for _ in a.shape))

    kernel = functools.partial(v_network_kernel, use_bf16=use_bf16)

    out = pl.pallas_call(
        kernel,
        out_shape=jax.ShapeDtypeStruct((1, b_pad), jnp.float32),
        grid=(b_pad // tile,),
        in_specs=[
            pl.BlockSpec((obs_dim, tile), lambda i: (0, i)),  # obs tile
            full(w1t), full(b1c),
            full(w2t), full(b2c),
            full(w3c), full(b3),
        ],
        out_specs=pl.BlockSpec((1, tile), lambda i: (0, i)),
        compiler_params=pltpu.CompilerParams(
            dimension_semantics=("parallel",)),
    )(obs_t, w1t, b1c, w2t, b2c, w3c, b3)

    return out[:, :B].T                     # (B, 1)


def init_params(key, obs_dim, hidden=64):
    """Deterministic init mimicking torch.nn.Linear defaults."""
    def linear(key, fan_in, fan_out):
        kw, kb = jax.random.split(key)
        bound = 1.0 / jnp.sqrt(jnp.float32(fan_in))
        w = jax.random.uniform(kw, (fan_in, fan_out), jnp.float32, -bound, bound)
        b = jax.random.uniform(kb, (1, fan_out), jnp.float32, -bound, bound)
        return w, b

    k1, k2, k3 = jax.random.split(key, 3)
    w1, b1 = linear(k1, obs_dim, hidden)
    w2, b2 = linear(k2, hidden, hidden)
    w3, b3 = linear(k3, hidden, 1)
    return dict(w1=w1, b1=b1, w2=w2, b2=b2, w3=w3, b3=b3)


def v_network_ref(obs, params):
    """Pure-JAX reference of the PyTorch forward for sanity checking."""
    h1 = jnp.tanh(obs @ params["w1"] + params["b1"])
    h2 = jnp.tanh(h1 @ params["w2"] + params["b2"])
    return h2 @ params["w3"] + params["b3"]


if __name__ == "__main__":
    key = jax.random.PRNGKey(0)
    obs_dim = 2          # MountainCarContinuous observation dim (position, velocity)
    batch = 8

    k_params, k_obs = jax.random.split(key)
    params = init_params(k_params, obs_dim)
    obs = jax.random.normal(k_obs, (batch, obs_dim), jnp.float32)

    ref = v_network_ref(obs, params)

    # f32 path (default): exact-precision matmul, tight tolerance.
    values = jax.block_until_ready(v_network_forward(obs, params))
    assert values.shape == (batch, 1)
    assert jnp.allclose(values, ref, atol=1e-5, rtol=1e-5)

    # bf16 EUP/MXU path (v6e/v7x speed path): relaxed tolerance.
    values_bf16 = jax.block_until_ready(
        v_network_forward(obs, params, use_bf16=True))
    assert values_bf16.shape == (batch, 1)
    assert jnp.allclose(values_bf16, ref, atol=2e-2, rtol=2e-2)

    print("KERNEL_OK")
</pallas_src>

<mosaic_0001>
module attributes {stable_mosaic.version = 11 : i64} {
  func.func @v_network_kernel(%arg0: i32, %arg1: memref<2x128xf32, #tpu.memory_space<vmem>>, %arg2: memref<64x2xf32, #tpu.memory_space<vmem>>, %arg3: memref<64x1xf32, #tpu.memory_space<vmem>>, %arg4: memref<64x64xf32, #tpu.memory_space<vmem>>, %arg5: memref<64x1xf32, #tpu.memory_space<vmem>>, %arg6: memref<64x1xf32, #tpu.memory_space<vmem>>, %arg7: memref<1x1xf32, #tpu.memory_space<vmem>>, %arg8: memref<1x128xf32, #tpu.memory_space<vmem>>) attributes {dimension_semantics = [#tpu.dimension_semantics<parallel>], iteration_bounds = array<i64: 1>, scalar_prefetch = 0 : i64, scratch_operands = 0 : i64, tpu.core_type = #tpu.core_type<tc>, window_params = [{transform_indices = @transform_0, window_bounds = array<i64: 2, 128>}, {pipeline_mode = #tpu.pipeline_mode<synchronous>, transform_indices = @transform_1, window_bounds = array<i64: 64, 2>}, {pipeline_mode = #tpu.pipeline_mode<synchronous>, transform_indices = @transform_2, window_bounds = array<i64: 64, 1>}, {pipeline_mode = #tpu.pipeline_mode<synchronous>, transform_indices = @transform_3, window_bounds = array<i64: 64, 64>}, {pipeline_mode = #tpu.pipeline_mode<synchronous>, transform_indices = @transform_4, window_bounds = array<i64: 64, 1>}, {pipeline_mode = #tpu.pipeline_mode<synchronous>, transform_indices = @transform_5, window_bounds = array<i64: 64, 1>}, {pipeline_mode = #tpu.pipeline_mode<synchronous>, transform_indices = @transform_6, window_bounds = array<i64: 1, 1>}, {transform_indices = @transform_7, window_bounds = array<i64: 1, 128>}]} {
    %c0 = arith.constant 0 : index
    %c0_0 = arith.constant 0 : index
    %0 = vector.load %arg1[%c0, %c0_0] : memref<2x128xf32, #tpu.memory_space<vmem>>, vector<2x128xf32>
    %c0_1 = arith.constant 0 : index
    %c0_2 = arith.constant 0 : index
    %1 = vector.load %arg2[%c0_1, %c0_2] : memref<64x2xf32, #tpu.memory_space<vmem>>, vector<64x2xf32>
    %c0_3 = arith.constant 0 : index
    %c0_4 = arith.constant 0 : index
    %2 = vector.load %arg3[%c0_3, %c0_4] : memref<64x1xf32, #tpu.memory_space<vmem>>, vector<64x1xf32>
    %3 = vector.extract_strided_slice %1 {offsets = [0, 0], sizes = [64, 1], strides = [1, 1]} : vector<64x2xf32> to vector<64x1xf32>
    %4 = vector.extract_strided_slice %0 {offsets = [0, 0], sizes = [1, 128], strides = [1, 1]} : vector<2x128xf32> to vector<1x128xf32>
    %5 = vector.broadcast %3 : vector<64x1xf32> to vector<64x128xf32>
    %6 = vector.broadcast %4 : vector<1x128xf32> to vector<64x128xf32>
    %7 = arith.mulf %5, %6 : vector<64x128xf32>
    %8 = vector.broadcast %2 : vector<64x1xf32> to vector<64x128xf32>
    %9 = arith.addf %8, %7 : vector<64x128xf32>
    %10 = vector.extract_strided_slice %1 {offsets = [0, 1], sizes = [64, 1], strides = [1, 1]} : vector<64x2xf32> to vector<64x1xf32>
    %11 = vector.extract_strided_slice %0 {offsets = [1, 0], sizes = [1, 128], strides = [1, 1]} : vector<2x128xf32> to vector<1x128xf32>
    %12 = vector.broadcast %10 : vector<64x1xf32> to vector<64x128xf32>
    %13 = vector.broadcast %11 : vector<1x128xf32> to vector<64x128xf32>
    %14 = arith.mulf %12, %13 : vector<64x128xf32>
    %15 = arith.addf %9, %14 : vector<64x128xf32>
    %16 = math.tanh %15 : vector<64x128xf32>
    %c0_5 = arith.constant 0 : index
    %c0_6 = arith.constant 0 : index
    %17 = vector.load %arg4[%c0_5, %c0_6] : memref<64x64xf32, #tpu.memory_space<vmem>>, vector<64x64xf32>
    %cst = arith.constant dense<0.000000e+00> : vector<64x128xf32>
    %18 = tpu.matmul %17, %16, %cst {dimension_numbers = #tpu.dot_dimension_numbers<[1], [0], [0], [1], [0, 0, 1, 1], [], []>, precision = #tpu.contract_precision<fp32>} : vector<64x64xf32>, vector<64x128xf32>, vector<64x128xf32> -> vector<64x128xf32>
    %c0_7 = arith.constant 0 : index
    %c0_8 = arith.constant 0 : index
    %19 = vector.load %arg5[%c0_7, %c0_8] : memref<64x1xf32, #tpu.memory_space<vmem>>, vector<64x1xf32>
    %20 = vector.broadcast %19 : vector<64x1xf32> to vector<64x128xf32>
    %21 = arith.addf %18, %20 : vector<64x128xf32>
    %22 = math.tanh %21 : vector<64x128xf32>
    %c0_9 = arith.constant 0 : index
    %c0_10 = arith.constant 0 : index
    %23 = vector.load %arg6[%c0_9, %c0_10] : memref<64x1xf32, #tpu.memory_space<vmem>>, vector<64x1xf32>
    %24 = vector.broadcast %23 : vector<64x1xf32> to vector<64x128xf32>
    %25 = arith.mulf %22, %24 : vector<64x128xf32>
    %cst_11 = arith.constant dense<0.000000e+00> : vector<128xf32>
    %26 = vector.multi_reduction <add>, %25, %cst_11 [0] : vector<64x128xf32> to vector<128xf32>
    %27 = vector.shape_cast %26 : vector<128xf32> to vector<1x128xf32>
    %c0_12 = arith.constant 0 : index
    %c0_13 = arith.constant 0 : index
    %28 = vector.load %arg7[%c0_12, %c0_13] : memref<1x1xf32, #tpu.memory_space<vmem>>, vector<1x1xf32>
    %29 = vector.broadcast %28 : vector<1x1xf32> to vector<1x128xf32>
    %30 = arith.addf %27, %29 : vector<1x128xf32>
    %c0_14 = arith.constant 0 : index
    %c0_15 = arith.constant 0 : index
    %31 = vector.load %arg8[%c0_14, %c0_15] : memref<1x128xf32, #tpu.memory_space<vmem>>, vector<1x128xf32>
    tpu.vector_store %arg8[%c0_14, %c0_15], %30 {strides = array<i32>} : memref<1x128xf32, #tpu.memory_space<vmem>>, vector<1x128xf32>,
    return
  }
  func.func @transform_0(%arg0: i32) -> (i32, i32) {
    %c0_i32 = arith.constant 0 : i32
    %c0_i32_0 = arith.constant 0 : i32
    return %c0_i32, %arg0 : i32, i32
  }
  func.func @transform_1(%arg0: i32) -> (i32, i32) {
    %c0_i32 = arith.constant 0 : i32
    %c0_i32_0 = arith.constant 0 : i32
    %c0_i32_1 = arith.constant 0 : i32
    return %c0_i32, %c0_i32_0 : i32, i32
  }
  func.func @transform_2(%arg0: i32) -> (i32, i32) {
    %c0_i32 = arith.constant 0 : i32
    %c0_i32_0 = arith.constant 0 : i32
    %c0_i32_1 = arith.constant 0 : i32
    return %c0_i32, %c0_i32_0 : i32, i32
  }
  func.func @transform_3(%arg0: i32) -> (i32, i32) {
    %c0_i32 = arith.constant 0 : i32
    %c0_i32_0 = arith.constant 0 : i32
    %c0_i32_1 = arith.constant 0 : i32
    return %c0_i32, %c0_i32_0 : i32, i32
  }
  func.func @transform_4(%arg0: i32) -> (i32, i32) {
    %c0_i32 = arith.constant 0 : i32
    %c0_i32_0 = arith.constant 0 : i32
    %c0_i32_1 = arith.constant 0 : i32
    return %c0_i32, %c0_i32_0 : i32, i32
  }
  func.func @transform_5(%arg0: i32) -> (i32, i32) {
    %c0_i32 = arith.constant 0 : i32
    %c0_i32_0 = arith.constant 0 : i32
    %c0_i32_1 = arith.constant 0 : i32
    return %c0_i32, %c0_i32_0 : i32, i32
  }
  func.func @transform_6(%arg0: i32) -> (i32, i32) {
    %c0_i32 = arith.constant 0 : i32
    %c0_i32_0 = arith.constant 0 : i32
    %c0_i32_1 = arith.constant 0 : i32
    return %c0_i32, %c0_i32_0 : i32, i32
  }
  func.func @transform_7(%arg0: i32) -> (i32, i32) {
    %c0_i32 = arith.constant 0 : i32
    %c0_i32_0 = arith.constant 0 : i32
    return %c0_i32, %arg0 : i32, i32
  }
}

</mosaic_0001>

<bundles_post_ra>
// kernel: tpu_custom_call.1
= control target key start
LH: loop header
LB: loop body
LE: loop exit
PB: predicated region body
PF: predicated region fallthrough
CT: control target
= control target key end

     0   :  { %s2114_s0 = inlined_call_operand.vmem [shape: f32[2,128], index: 0, kind: input, shape index: {}]   ;;  %s2115_s1 = inlined_call_operand.vmem [shape: f32[64,2], index: 1, kind: input, shape index: {}]   ;;  %s2116_s2 = inlined_call_operand.vmem [shape: f32[64,1], index: 2, kind: input, shape index: {}]   ;;  %s2117_s3 = inlined_call_operand.vmem [shape: f32[64,64], index: 3, kind: input, shape index: {}]   ;;  %s2118_s4 = inlined_call_operand.vmem [shape: f32[64,1], index: 4, kind: input, shape index: {}]   ;;  %s2119_s5 = inlined_call_operand.vmem [shape: f32[64,1], index: 5, kind: input, shape index: {}]   ;;  %s2120_s6 = inlined_call_operand.<no memory space> [shape: f32[1,1], index: 6, kind: input, shape index: {}]   ;;  %s2121_s7 = inlined_call_operand.hbm [shape: f32[1,128], index: 7, kind: output, shape index: {}]  }
   0x1   :  { %v12_v0 = vstv %s2120_s6 }
   0x2   :  { %13 = vst [vmem:[#allocation2] sm:$0x1] %v12_v0 }
   0x3   :  { %v38_v1 = vld [vmem:[%s2116_s2] sm:$0xff]  ;;  %v1707_v3 = vmov 0   ;;  %v39_v4 = vld [vmem:[%s2116_s2 + $0x8] sm:$0xff] }
   0x4   :  { %v30_v2 = vld [vmem:[%s2115_s1] sm:$0xff]  ;;  %1640 = vset.pattern.permute.xlu1 %v1707_v3  ;;  %1639 = vset.pattern.permute.xlu0 %v1707_v3  ;;  %v31_v5 = vld [vmem:[%s2115_s1 + $0x8] sm:$0xff] }
   0x5   :  { %100 = vperm.xlu1 %1640, %v38_v1   ;;  %48 = vperm.xlu0 %1639, %v30_v2  }
   0x6   :  { %14 = vsyncpa [#allocation4], 0  ;;  %v33_v6 = vld [vmem:[%s2115_s1 + $0x18] sm:$0xff]  ;;  %v1708_v7 = vmov 1   ;;  %v35_v8 = vld [vmem:[%s2115_s1 + $0x28] sm:$0xff]  ;;  %vm262_vm0 = vcmask 523264   ;;  %v86_v27 = vlaneseq }
   0x7   :  { %v32_v9 = vld [vmem:[%s2115_s1 + $0x10] sm:$0xff]  ;;  %v37_v10 = vld [vmem:[%s2115_s1 + $0x38] sm:$0xff]  ;;  %v34_v13 = vld [vmem:[%s2115_s1 + $0x20] sm:$0xff] }
   0x8   :  { %v40_v11 = vld [vmem:[%s2116_s2 + $0x10] sm:$0xff]  ;;  %v41_v12 = vld [vmem:[%s2116_s2 + $0x18] sm:$0xff]  ;;  %v42_v15 = vld [vmem:[%s2116_s2 + $0x20] sm:$0xff]  ;;  %v1815_v30 = vshrl.u32 %v86_v27, 7 }
   0x9   :  { %105 = vperm.xlu1 %1640, %v39_v4   ;;  %53 = vperm.xlu0 %1639, %v31_v5   ;;  %v36_v14 = vld [vmem:[%s2115_s1 + $0x30] sm:$0xff]  ;;  %v43_v16 = vld [vmem:[%s2116_s2 + $0x28] sm:$0xff]  ;;  %v45_v18 = vld [vmem:[%s2116_s2 + $0x38] sm:$0xff] }
   0xa   :  { %v44_v17 = vld [vmem:[%s2116_s2 + $0x30] sm:$0xff]  ;;  %v206_v19 = vld [vmem:[%s2117_s3] sm:$0xff]  ;;  %v215_v33 = vld [vmem:[%s2118_s4 + $0x8] sm:$0xff]  ;;  %v88_v36 = vsub.s32 0, %v1815_v30  ;;  %v180_v37 = vsub.s32 1, %v1815_v30 }
   0xb   :  { %v264_v20 = vsel %vm262_vm0, %v206_v19, 0  ;;  %v214_v29 = vld [vmem:[%s2118_s4] sm:$0xff]  ;;  %v216_v34 = vld [vmem:[%s2118_s4 + $0x10] sm:$0xff]  ;;  %v217_v41 = vld [vmem:[%s2118_s4 + $0x18] sm:$0xff] }
   0xc   :  { %v1805_v21 = vand.u32 4294901760, %v264_v20  ;;  %v218_v35 = vld [vmem:[%s2118_s4 + $0x20] sm:$0xff]  ;;  %v220_v42 = vld [vmem:[%s2118_s4 + $0x30] sm:$0xff]  ;;  %v219_v46 = vld [vmem:[%s2118_s4 + $0x28] sm:$0xff] }
   0xd   :  { %1641 = vset.pattern.permute.xlu1 %v1708_v7  ;;  %63 = vperm.xlu0 %1639, %v33_v6   ;;  %v29_v39 = vld [vmem:[%s2114_s0] sm:$0x3]  ;;  %v221_v52 = vld [vmem:[%s2118_s4 + $0x38] sm:$0xff]  ;;  %v1135_v56 = vld [vmem:[%s2119_s5 + $0x10] sm:$0xff] }
   0xe   :  { %151 = vperm.xlu1 %1641, %v31_v5   ;;  %v1808_v22 = vsub.f32 %v264_v20, %v1805_v21  ;;  %v1839_v43 = vrot.slane %v29_v39, %v88_v36  ;;  %v1841_v44 = vrot.slane %v29_v39, %v180_v37  ;;  %v1133_v49 = vld [vmem:[%s2119_s5] sm:$0xff]  ;;  %v1134_v59 = vld [vmem:[%s2119_s5 + $0x8] sm:$0xff]  ;;  %v1136_v4 = vld [vmem:[%s2119_s5 + $0x18] sm:$0xff] }
   0xf   :  { %v1137_v63 = vld [vmem:[%s2119_s5 + $0x20] sm:$0xff] }
  0x10   :  { %v362_v23 = vand.u32 4294901760, %v1808_v22 }
  0x11   :  { %73 = vperm.xlu0 %1639, %v35_v8  }
  0x12   :  { %1642 = vset.pattern.permute.xlu1 %v1707_v3  ;;  %v363_v24 = vsub.f32 %v1808_v22, %v362_v23  ;;  %1424 = vmatprep.mubr.f32.mxu0 %v362_v23 }
  0x13   :  { %58 = vperm.xlu1 %1642, %v32_v9  }
  0x14   :  { %v364_v25 = vand.u32 4294901760, %v363_v24 }
  0x15   :  { %83 = vperm.xlu0 %1639, %v37_v10  }
  0x16   :  { %1340 = vmatprep.mubr.f32.mxu1 %v364_v25 }
  0x17   :  { %110 = vperm.xlu1 %1642, %v40_v11  }
  0x19   :  { %1647 = vset.pattern.permute.xlu0 %v1708_v7 }
  0x1a   :  { %147 = vperm.xlu0 %1647, %v30_v2  }
  0x1b   :  { %115 = vperm.xlu1 %1642, %v41_v12   ;;  %v1138_v12 = vld [vmem:[%s2119_s5 + $0x28] sm:$0xff] }
  0x1e   :  { %155 = vperm.xlu0 %1647, %v32_v9  }
  0x1f   :  { %1643 = vset.pattern.permute.xlu1 %v1708_v7 }
  0x20   :  { %159 = vperm.xlu1 %1643, %v33_v6  }
  0x22   :  { %163 = vperm.xlu0 %1647, %v34_v13  }
  0x24   :  { %1644 = vset.pattern.permute.xlu1 %v1707_v3 }
  0x25   :  { %68 = vperm.xlu1 %1644, %v34_v13  }
  0x26   :  { %171 = vperm.xlu0 %1647, %v36_v14  }
  0x29   :  { %120 = vperm.xlu1 %1644, %v42_v15  }
  0x2a   :  { %1650 = vset.pattern.permute.xlu0 %v1707_v3 }
  0x2b   :  { %229 = vperm.xlu0 %1650, %v215_v33  }
  0x2d   :  { %125 = vperm.xlu1 %1644, %v43_v16   ;;  %v1140_v16 = vld [vmem:[%s2119_s5 + $0x38] sm:$0xff] }
  0x2f   :  { %244 = vperm.xlu0 %1650, %v218_v35  }
  0x31   :  { %1645 = vset.pattern.permute.xlu1 %v1708_v7 }
  0x32   :  { %167 = vperm.xlu1 %1645, %v35_v8  }
  0x33   :  { %254 = vperm.xlu0 %1650, %v220_v42  }
  0x36   :  { %1646 = vset.pattern.permute.xlu1 %v1707_v3 }
  0x37   :  { %78 = vperm.xlu1 %1646, %v36_v14   ;;  %1143 = vperm.xlu0 %1650, %v1133_v49   ;;  %v1202_v14 = vld [vmem:[#allocation2] sm:$0x1]  ;;  %v207_v49 = vld [vmem:[%s2117_s3 + $0x8] sm:$0xff] }
  0x3b   :  { %130 = vperm.xlu1 %1646, %v44_v17   ;;  %1153 = vperm.xlu0 %1650, %v1135_v56  }
  0x3f   :  { %135 = vperm.xlu1 %1646, %v45_v18   ;;  %1163 = vperm.xlu0 %1650, %v1137_v63   ;;  %v209_v63 = vld [vmem:[%s2117_s3 + $0x18] sm:$0xff] }
  0x43   :  { %1648 = vset.pattern.permute.xlu1 %v1708_v7  ;;  %v1139_v7 = vld [vmem:[%s2119_s5 + $0x30] sm:$0xff] }
  0x44   :  { %175 = vperm.xlu1 %1648, %v37_v10   ;;  %1173 = vperm.xlu0 %1650, %v1139_v7  }
  0x48   :  { %1649 = vset.pattern.permute.xlu1 %v1707_v3  ;;  %1205 = vperm.xlu0 %1650, %v1202_v14  }
  0x49   :  { %224 = vperm.xlu1 %1649, %v214_v29  }
  0x4d   :  { %234 = vperm.xlu1 %1649, %v216_v34  }
  0x51   :  { %239 = vperm.xlu1 %1649, %v217_v41  }
  0x55   :  { %249 = vperm.xlu1 %1649, %v219_v46  }
  0x59   :  { %259 = vperm.xlu1 %1649, %v221_v52  }
  0x5d   :  { %1148 = vperm.xlu1 %1649, %v1134_v59  }
  0x61   :  { %1158 = vperm.xlu1 %1649, %v1136_v4  }
  0x65   :  { %1168 = vperm.xlu1 %1649, %v1138_v12  }
  0x69   :  { %1178 = vperm.xlu1 %1649, %v1140_v16  }
  0x84   :  { %v101_v26 = vpop.permute.xlu1 %100  ;;  %v49_v28 = vpop.permute.xlu0 %48 }
  0x85   :  { %v90_v53 = vmul.f32 %v1839_v43, %v49_v28 }
  0x87   :  { %v138_v60 = vadd.f32 %v101_v26, %v90_v53 }
  0x88   :  { %v106_v31 = vpop.permute.xlu1 %105  ;;  %v54_v32 = vpop.permute.xlu0 %53 }
  0x89   :  { %v91_v47 = vmul.f32 %v1839_v43, %v54_v32 }
  0x8b   :  { %v139_v54 = vadd.f32 %v106_v31, %v91_v47 }
  0x8c   :  { %v64_v38 = vpop.permute.xlu0 %63 }
  0x8d   :  { %v152_v40 = vpop.permute.xlu1 %151  ;;  %v93_v0 = vmul.f32 %v1839_v43, %v64_v38 }
  0x8e   :  { %v183_v50 = vmul.f32 %v1841_v44, %v152_v40 }
  0x90   :  { %v1843_v45 = vpop.permute.xlu0 %73  ;;  %v191_v57 = vadd.f32 %v183_v50, %v139_v54 }
  0x91   :  { %v95_v35 = vmul.f32 %v1839_v43, %v1843_v45 }
  0x92   :  { %v59_v48 = vpop.permute.xlu1 %58  ;;  %1651 = vtanh.f32 %v191_v57 }
  0x93   :  { %v92_v1 = vmul.f32 %v1839_v43, %v59_v48 }
  0x94   :  { %v1853_v51 = vpop.permute.xlu0 %83 }
  0x96   :  { %v111_v55 = vpop.permute.xlu1 %110 }
  0x97   :  { %v140_v5 = vadd.f32 %v111_v55, %v92_v1  ;;  %v267_v55 = vsel %vm262_vm0, %v207_v49, 0 }
  0x99   :  { %v148_v58 = vpop.permute.xlu0 %147 }
  0x9a   :  { %v182_v61 = vmul.f32 %v1841_v44, %v148_v58  ;;  %v116_v62 = vpop.permute.xlu1 %115  ;;  %v208_v58 = vld [vmem:[%s2117_s3 + $0x10] sm:$0xff] }
  0x9b   :  { %v141_v9 = vadd.f32 %v116_v62, %v93_v0  ;;  %v97_v62 = vmul.f32 %v1839_v43, %v1853_v51 }
  0x9c   :  { %v190_v2 = vadd.f32 %v182_v61, %v138_v60  ;;  %v1885_v17 = vpop.eup %1651  ;;  %v1922_v61 = vand.u32 4294901760, %v267_v55 }
  0x9d   :  { %v156_v3 = vpop.permute.xlu0 %155  ;;  %v291_v20 = vand.u32 4294901760, %v1885_v17 }
  0x9e   :  { %1653 = vtanh.f32 %v190_v2  ;;  %v184_v6 = vmul.f32 %v1841_v44, %v156_v3  ;;  %v270_v2 = vsel %vm262_vm0, %v208_v58, 0 }
  0x9f   :  { %v160_v8 = vpop.permute.xlu1 %159 }
  0xa0   :  { %v192_v10 = vadd.f32 %v184_v6, %v140_v5  ;;  %v185_v11 = vmul.f32 %v1841_v44, %v160_v8  ;;  %v1936_v5 = vsub.f32 %v267_v55, %v1922_v61  ;;  %v1941_v6 = vand.u32 4294901760, %v270_v2 }
  0xa1   :  { %v164_v24 = vpop.permute.xlu0 %163  ;;  %v1952_v8 = vsub.f32 %v1885_v17, %v291_v20  ;;  %v212_v17 = vld [vmem:[%s2117_s3 + $0x30] sm:$0xff] }
  0xa2   :  { %1655 = vtanh.f32 %v192_v10  ;;  %v193_v13 = vadd.f32 %v185_v11, %v141_v9  ;;  %v186_v29 = vmul.f32 %v1841_v44, %v164_v24  ;;  %v211_v10 = vld [vmem:[%s2117_s3 + $0x28] sm:$0xff]  ;;  %v372_v11 = vand.u32 4294901760, %v1936_v5  ;;  %v213_v24 = vld [vmem:[%s2117_s3 + $0x38] sm:$0xff] }
  0xa3   :  { %v279_v16 = vsel %vm262_vm0, %v211_v10, 0 }
  0xa4   :  { %1657 = vtanh.f32 %v193_v13  ;;  %v69_v15 = vpop.permute.xlu1 %68  ;;  %v1962_v13 = vsub.f32 %v270_v2, %v1941_v6 }
  0xa5   :  { %v94_v25 = vmul.f32 %v1839_v43, %v69_v15  ;;  %v172_v48 = vpop.permute.xlu0 %171 }
  0xa6   :  { %v188_v53 = vmul.f32 %v1841_v44, %v172_v48 }
  0xa8   :  { %v1887_v18 = vpop.eup %1653  ;;  %v121_v19 = vpop.permute.xlu1 %120 }
  0xa9   :  { %v288_v23 = vand.u32 4294901760, %v1887_v18  ;;  %v142_v28 = vadd.f32 %v121_v19, %v94_v25  ;;  %v373_v25 = vsub.f32 %v1936_v5, %v372_v11 }
  0xab   :  { %v1894_v26 = vpack.c.bf16 %v291_v20, %v288_v23  ;;  %v194_v37 = vadd.f32 %v186_v29, %v142_v28  ;;  %v1947_v7 = vsub.f32 %v1887_v18, %v288_v23  ;;  %v450_v18 = vand.u32 4294901760, %v1952_v8 }
  0xac   :  { %v1896_v27 = vpop.eup %1655  ;;  %v126_v31 = vpop.permute.xlu1 %125  ;;  %v382_v29 = vand.u32 4294901760, %v1962_v13 }
  0xad   :  { %1493 = vmatprep.subr.bf16.mxu1 %v1894_v26  ;;  %1541 = vmatprep.subr.bf16.mxu0 %v1894_v26  ;;  %v294_v33 = vand.u32 4294901760, %v1896_v27  ;;  %v143_v40 = vadd.f32 %v126_v31, %v95_v35  ;;  %1659 = vtanh.f32 %v194_v37  ;;  %v443_v14 = vand.u32 4294901760, %v1947_v7 }
  0xae   :  { %v1658_v32 = vpop.eup %1657  ;;  %1495 = vmatpush3.bf16.msra.mxu1 %v1894_v26  ;;  %1543 = vmatpush3.bf16.msra.mxu0 %v1894_v26  ;;  %v1987_v31 = vand.u32 4294901760, %v279_v16  ;;  %v285_v35 = vsel %vm262_vm0, %v213_v24, 0  ;;  %v451_v37 = vsub.f32 %v1952_v8, %v450_v18  ;;  %v383_v48 = vsub.f32 %v1962_v13, %v382_v29 }
  0xaf   :  { %v297_v34 = vand.u32 4294901760, %v1658_v32  ;;  %v1973_v19 = vsub.f32 %v1896_v27, %v294_v33  ;;  %v282_v27 = vsel %vm262_vm0, %v212_v17, 0 }
  0xb0   :  { %v2007_v49 = vsub.f32 %v279_v16, %v1987_v31 }
  0xb1   :  { %v1906_v38 = vpack.c.bf16 %v297_v34, %v294_v33  ;;  %v168_v39 = vpop.permute.xlu1 %167  ;;  %v1965_v15 = vsub.f32 %v1658_v32, %v297_v34  ;;  %v444_v32 = vsub.f32 %v1947_v7, %v443_v14 }
  0xb2   :  { %v187_v41 = vmul.f32 %v1841_v44, %v168_v39  ;;  %v457_v39 = vand.u32 4294901760, %v1973_v19 }
  0xb3   :  { %1497 = vmatprep.subr.bf16.mxu1 %v1906_v38  ;;  %1545 = vmatprep.subr.bf16.mxu0 %v1906_v38  ;;  %v464_v33 = vand.u32 4294901760, %v1965_v15  ;;  %v445_v55 = vand.u32 4294901760, %v444_v32 }
  0xb4   :  { %v195_v42 = vadd.f32 %v187_v41, %v143_v40  ;;  %1499 = vmatpush3.bf16.msra.mxu1 %v1906_v38  ;;  %1547 = vmatpush3.bf16.msra.mxu0 %v1906_v38  ;;  %v458_v58 = vsub.f32 %v1973_v19, %v457_v39 }
  0xb6   :  { %1661 = vtanh.f32 %v195_v42  ;;  %v79_v46 = vpop.permute.xlu1 %78  ;;  %v459_v17 = vand.u32 4294901760, %v458_v58 }
  0xb7   :  { %v96_v45 = vmul.f32 %v1839_v43, %v79_v46  ;;  %v1660_v52 = vpop.eup %1659  ;;  %v273_v43 = vsel %vm262_vm0, %v209_v63, 0  ;;  %v374_v46 = vand.u32 4294901760, %v373_v25 }
  0xb8   :  { %v300_v59 = vand.u32 4294901760, %v1660_v52  ;;  %v1954_v9 = vand.u32 4294901760, %v273_v43 }
  0xba   :  { %v131_v47 = vpop.permute.xlu1 %130  ;;  %v1976_v20 = vsub.f32 %v273_v43, %v1954_v9 }
  0xbb   :  { %v144_v50 = vadd.f32 %v131_v47, %v96_v45  ;;  %v2001_v45 = vsub.f32 %v1660_v52, %v300_v59  ;;  %v452_v52 = vand.u32 4294901760, %v451_v37 }
  0xbc   :  { %v392_v40 = vand.u32 4294901760, %v1976_v20 }
  0xbd   :  { %v196_v57 = vadd.f32 %v188_v53, %v144_v50  ;;  %v2009_v50 = vand.u32 4294901760, %v282_v27  ;;  %v2011_v53 = vand.u32 4294901760, %v285_v35  ;;  %v471_v63 = vand.u32 4294901760, %v2001_v45 }
  0xbe   :  { %v136_v54 = vpop.permute.xlu1 %135 }
  0xbf   :  { %1663 = vtanh.f32 %v196_v57  ;;  %v145_v3 = vadd.f32 %v136_v54, %v97_v62  ;;  %v2027_v43 = vsub.f32 %v282_v27, %v2009_v50  ;;  %v472_v24 = vsub.f32 %v2001_v45, %v471_v63 }
  0xc0   :  { %v1662_v56 = vpop.eup %1661 }
  0xc1   :  { %v303_v60 = vand.u32 4294901760, %v1662_v56  ;;  %v422_v32 = vand.u32 4294901760, %v2027_v43 }
  0xc3   :  { %v1929_v0 = vpack.c.bf16 %v303_v60, %v300_v59  ;;  %v176_v1 = vpop.permute.xlu1 %175  ;;  %v1992_v34 = vsub.f32 %v1662_v56, %v303_v60  ;;  %v465_v56 = vsub.f32 %v1965_v15, %v464_v33  ;;  %v393_v59 = vsub.f32 %v1976_v20, %v392_v40 }
  0xc4   :  { %v189_v4 = vmul.f32 %v1841_v44, %v176_v1  ;;  %v210_v44 = vld [vmem:[%s2117_s3 + $0x20] sm:$0xff]  ;;  %s1709_s3 = smov [#allocation3]  }
  0xc5   :  { %1501 = vmatprep.subr.bf16.mxu1 %v1929_v0  ;;  %1549 = vmatprep.subr.bf16.mxu0 %v1929_v0  ;;  %v276_v12 = vsel %vm262_vm0, %v210_v44, 0  ;;  %v478_v57 = vand.u32 4294901760, %v1992_v34  ;;  %v1508_v44 = vpack.c.bf16 %v452_v52, %v445_v55  ;;  %v466_v10 = vand.u32 4294901760, %v465_v56  ;;  %s1220_s28 = sshll.u32 %s1709_s3, 4  ;;  %s1221_s28 = int_to_ptr.vmem [resolvable:$true] %s1220_s28 }
  0xc6   :  { %v197_v51 = vadd.f32 %v189_v4, %v145_v3  ;;  %1503 = vmatpush3.bf16.msra.mxu1 %v1929_v0  ;;  %1551 = vmatpush3.bf16.msra.mxu0 %v1929_v0  ;;  %v1978_v23 = vand.u32 4294901760, %v276_v12  ;;  %v1556_v3 = vpack.c.bf16 %v450_v18, %v443_v14  ;;  %v412_v4 = vand.u32 4294901760, %v2007_v49  ;;  %s1683_s29 = scalar_lea.vmem %s1221_s28, 16  ;;  %s1687_s30 = scalar_lea.vmem %s1221_s28, 32 }
  0xc7   :  { %v384_v14 = vand.u32 4294901760, %v383_v48  ;;  %v394_v18 = vand.u32 4294901760, %v393_v59  ;;  %v1512_v37 = vpack.c.bf16 %v466_v10, %v459_v17  ;;  %p1684_p0 = scmp.ne.s32.totalorder %s1221_s28, %s1683_s29  ;;  %p1688_p1 = scmp.lt.s32.totalorder %s1221_s28, %s1221_s28 }
  0xc8   :  { %1665 = vtanh.f32 %v197_v51  ;;  %v1999_v41 = vsub.f32 %v276_v12, %v1978_v23  ;;  %v2030_v51 = vsub.f32 %v285_v35, %v2011_v53  ;;  %v479_v12 = vsub.f32 %v1992_v34, %v478_v57  ;;  %p1689_p2 = scmp.lt.s32.totalorder %s1687_s30, %s1683_s29 }
  0xc9   :  { %v1664_v28 = vpop.eup %1663  ;;  %v413_v27 = vsub.f32 %v2007_v49, %v412_v4 }
  0xca   :  { %v306_v42 = vand.u32 4294901760, %v1664_v28  ;;  %v402_v60 = vand.u32 4294901760, %v1999_v41  ;;  %v432_v35 = vand.u32 4294901760, %v2030_v51  ;;  %p1690_p3 = por %p1689_p2, %p1688_p1 }
  0xcb   :  { %v414_v56 = vand.u32 4294901760, %v413_v27 }
  0xcc   :  { %v2021_v1 = vsub.f32 %v1664_v28, %v306_v42  ;;  %v403_v28 = vsub.f32 %v1999_v41, %v402_v60  ;;  %v433_v58 = vsub.f32 %v2030_v51, %v432_v35  ;;  %p1691_p4 = pnand %p1690_p3, %p1684_p0 }
  0xce   :  { %v485_v25 = vand.u32 4294901760, %v2021_v1  ;;  %v434_v10 = vand.u32 4294901760, %v433_v58 }
  0xd0   :  { %v486_v55 = vsub.f32 %v2021_v1, %v485_v25 }
  0xd2   :  { %v1666_v47 = vpop.eup %1665  ;;  %v487_v59 = vand.u32 4294901760, %v486_v55 }
  0xd3   :  { %v309_v54 = vand.u32 4294901760, %v1666_v47 }
  0xd5   :  { %v2018_v62 = vpack.c.bf16 %v309_v54, %v306_v42  ;;  %v2023_v2 = vsub.f32 %v1666_v47, %v309_v54  ;;  %v1560_v42 = vpack.c.bf16 %v464_v33, %v457_v39  ;;  %v480_v47 = vand.u32 4294901760, %v479_v12 }
  0xd6   :  { %v473_v54 = vand.u32 4294901760, %v472_v24  ;;  %v1564_v39 = vpack.c.bf16 %v478_v57, %v471_v63  ;;  %v1528_v57 = vpack.c.bf16 %v1965_v15, %v1973_v19 }
  0xd7   :  { %1505 = vmatprep.subr.bf16.mxu1 %v2018_v62  ;;  %1553 = vmatprep.subr.bf16.mxu0 %v2018_v62  ;;  %v492_v16 = vand.u32 4294901760, %v2023_v2 }
  0xd8   :  { %1507 = vmatpush3.bf16.msra.mxu1 %v2018_v62  ;;  %1555 = vmatpush3.bf16.msra.mxu0 %v2018_v62  ;;  %v1516_v33 = vpack.c.bf16 %v480_v47, %v473_v54 }
  0xd9   :  { %1509 = vmatprep.subr.bf16.mxu1 %v1508_v44  ;;  %1557 = vmatprep.subr.bf16.mxu0 %v1556_v3  ;;  %v493_v48 = vsub.f32 %v2023_v2, %v492_v16 }
  0xdb   :  { %1341 = vmatmul.mubr.f32.vlgmr.msra.gmra.mrb[0].mxu1 %v374_v46  ;;  %1425 = vmatmul.mubr.f32.vlgmr.msra.gmra.mrb[0].mxu0 %v372_v11  ;;  %v404_v46 = vand.u32 4294901760, %v403_v28  ;;  %v423_v11 = vsub.f32 %v2027_v43, %v422_v32  ;;  %v494_v52 = vand.u32 4294901760, %v493_v48 }
  0xdc   :  { %1511 = vmatpush3.bf16.msra.mxu1 %v1508_v44  ;;  %1559 = vmatpush3.bf16.msra.mxu0 %v1556_v3  ;;  %v1568_v44 = vpack.c.bf16 %v492_v16, %v485_v25 }
  0xdd   :  { %1513 = vmatprep.subr.bf16.mxu1 %v1512_v37  ;;  %1561 = vmatprep.subr.bf16.mxu0 %v1560_v42  ;;  %v424_v3 = vand.u32 4294901760, %v423_v11 }
  0xde   :  { %1343 = vmatprep.mubr.f32.mxu1 %v384_v14  ;;  %1427 = vmatprep.mubr.f32.mxu0 %v382_v29  ;;  %v1520_v29 = vpack.c.bf16 %v494_v52, %v487_v59 }
  0xdf   :  { %1344 = vmatmul.mubr.f32.gmra.mrb[2].mxu1 %v394_v18  ;;  %1428 = vmatmul.mubr.f32.gmra.mrb[2].mxu0 %v392_v40  ;;  %v1524_v40 = vpack.c.bf16 %v1952_v8, %v1947_v7  ;;  %v1532_v7 = vpack.c.bf16 %v1992_v34, %v2001_v45 }
  0xe0   :  { %1515 = vmatpush3.bf16.msra.mxu1 %v1512_v37  ;;  %1563 = vmatpush3.bf16.msra.mxu0 %v1560_v42 }
  0xe1   :  { %1517 = vmatprep.subr.bf16.mxu1 %v1516_v33  ;;  %1565 = vmatprep.subr.bf16.mxu0 %v1564_v39 }
  0xe2   :  { %1346 = vmatprep.mubr.f32.mxu1 %v404_v46  ;;  %1430 = vmatprep.mubr.f32.mxu0 %v402_v60 }
  0xe3   :  { %1347 = vmatmul.mubr.f32.gmra.mrb[4].mxu1 %v414_v56  ;;  %1431 = vmatmul.mubr.f32.gmra.mrb[4].mxu0 %v412_v4 }
  0xe4   :  { %1519 = vmatpush3.bf16.msra.mxu1 %v1516_v33  ;;  %1567 = vmatpush3.bf16.msra.mxu0 %v1564_v39 }
  0xe5   :  { %1521 = vmatprep.subr.bf16.mxu1 %v1520_v29  ;;  %1569 = vmatprep.subr.bf16.mxu0 %v1568_v44 }
  0xe6   :  { %1349 = vmatprep.mubr.f32.mxu1 %v424_v3  ;;  %1433 = vmatprep.mubr.f32.mxu0 %v422_v32 }
  0xe7   :  { %1350 = vmatmul.mubr.f32.gmra.mrb[6].mxu1 %v434_v10  ;;  %1434 = vmatmul.mubr.f32.gmra.mrb[6].mxu0 %v432_v35 }
  0xe8   :  { %1523 = vmatpush3.bf16.msra.mxu1 %v1520_v29  ;;  %1571 = vmatpush3.bf16.msra.mxu0 %v1568_v44 }
  0xe9   :  { %1525 = vmatprep.subr.bf16.mxu1 %v1524_v40  ;;  %1573 = vmatprep.subr.bf16.mxu0 %v1894_v26 }
  0xea   :  { %1368 = vmatprep.mubr.f32.mxu1 %v1805_v21  ;;  %1452 = vmatprep.mubr.f32.mxu0 %v1805_v21 }
  0xeb   :  { %1369 = vmatmul.mubr.f32.vlgmr.msra.gmra.mrb[0].mxu1 %v1922_v61  ;;  %1453 = vmatmul.mubr.f32.vlgmr.msra.gmra.mrb[0].mxu0 %v1922_v61 }
  0xec   :  { %1527 = vmatpush3.bf16.msra.mxu1 %v1524_v40  ;;  %1575 = vmatpush3.bf16.msra.mxu0 %v1894_v26  ;;  %v1536_v26 = vpack.c.bf16 %v2023_v2, %v2021_v1 }
  0xed   :  { %1529 = vmatprep.subr.bf16.mxu1 %v1528_v57  ;;  %1577 = vmatprep.subr.bf16.mxu0 %v1906_v38 }
  0xee   :  { %1371 = vmatprep.mubr.f32.mxu1 %v1941_v6  ;;  %1455 = vmatprep.mubr.f32.mxu0 %v1941_v6 }
  0xef   :  { %1372 = vmatmul.mubr.f32.gmra.mrb[2].mxu1 %v1954_v9  ;;  %1456 = vmatmul.mubr.f32.gmra.mrb[2].mxu0 %v1954_v9 }
  0xf0   :  { %1531 = vmatpush3.bf16.msra.mxu1 %v1528_v57  ;;  %1579 = vmatpush3.bf16.msra.mxu0 %v1906_v38 }
  0xf1   :  { %1533 = vmatprep.subr.bf16.mxu1 %v1532_v7  ;;  %1581 = vmatprep.subr.bf16.mxu0 %v1929_v0 }
  0xf2   :  { %1374 = vmatprep.mubr.f32.mxu1 %v1978_v23  ;;  %1458 = vmatprep.mubr.f32.mxu0 %v1978_v23 }
  0xf3   :  { %1375 = vmatmul.mubr.f32.gmra.mrb[4].mxu1 %v1987_v31  ;;  %1459 = vmatmul.mubr.f32.gmra.mrb[4].mxu0 %v1987_v31 }
  0xf4   :  { %1535 = vmatpush3.bf16.msra.mxu1 %v1532_v7  ;;  %1583 = vmatpush3.bf16.msra.mxu0 %v1929_v0 }
  0xf5   :  { %1537 = vmatprep.subr.bf16.mxu1 %v1536_v26  ;;  %1585 = vmatprep.subr.bf16.mxu0 %v2018_v62 }
  0xf6   :  { %1377 = vmatprep.mubr.f32.mxu1 %v2009_v50  ;;  %1461 = vmatprep.mubr.f32.mxu0 %v2009_v50 }
  0xf7   :  { %1378 = vmatmul.mubr.f32.gmra.mrb[6].mxu1 %v2011_v53  ;;  %1462 = vmatmul.mubr.f32.gmra.mrb[6].mxu0 %v2011_v53 }
  0xf8   :  { %1539 = vmatpush3.bf16.msra.mxu1 %v1536_v26  ;;  %1587 = vmatpush3.bf16.msra.mxu0 %v2018_v62 }
  0xf9   :  { %1396 = vmatprep.mubr.f32.mxu1 %v1808_v22  ;;  %1480 = vmatprep.mubr.f32.mxu0 %v1805_v21  ;;  %v225_v21 = vpop.permute.xlu1 %224 }
  0xfb   :  { %1397 = vmatmul.mubr.f32.vlgmr.msra.gmra.mrb[0].mxu1 %v1936_v5  ;;  %1481 = vmatmul.mubr.f32.vlgmr.msra.gmra.mrb[0].mxu0 %v1922_v61  ;;  %v230_v61 = vpop.permute.xlu0 %229 }
  0xfc   :  { %1399 = vmatprep.mubr.f32.mxu1 %v1962_v13  ;;  %1483 = vmatprep.mubr.f32.mxu0 %v1941_v6 }
  0xfd   :  { %v235_v22 = vpop.permute.xlu1 %234 }
  0xff   :  { %1400 = vmatmul.mubr.f32.gmra.mrb[2].mxu1 %v1976_v20  ;;  %1484 = vmatmul.mubr.f32.gmra.mrb[2].mxu0 %v1954_v9  ;;  %v245_v5 = vpop.permute.xlu0 %244 }
 0x100   :  { %1402 = vmatprep.mubr.f32.mxu1 %v1999_v41  ;;  %1486 = vmatprep.mubr.f32.mxu0 %v1978_v23 }
 0x101   :  { %v240_v38 = vpop.permute.xlu1 %239 }
 0x103   :  { %1403 = vmatmul.mubr.f32.gmra.mrb[4].mxu1 %v2007_v49  ;;  %1487 = vmatmul.mubr.f32.gmra.mrb[4].mxu0 %v1987_v31  ;;  %v255_v23 = vpop.permute.xlu0 %254 }
 0x104   :  { %1405 = vmatprep.mubr.f32.mxu1 %v2027_v43  ;;  %1489 = vmatprep.mubr.f32.mxu0 %v2009_v50 }
 0x105   :  { %v250_v0 = vpop.permute.xlu1 %249 }
 0x107   :  { %1406 = vmatmul.mubr.f32.gmra.mrb[6].mxu1 %v2030_v51  ;;  %1490 = vmatmul.mubr.f32.gmra.mrb[6].mxu0 %v2011_v53  ;;  %v1144_v12 = vpop.permute.xlu0 %1143 }
 0x109   :  { %v260_v20 = vpop.permute.xlu1 %259 }
 0x10b   :  { %v1154_v48 = vpop.permute.xlu0 %1153 }
 0x10d   :  { %v1149_v14 = vpop.permute.xlu1 %1148 }
 0x10f   :  { %v1164_v58 = vpop.permute.xlu0 %1163 }
 0x111   :  { %v1159_v56 = vpop.permute.xlu1 %1158 }
 0x115   :  { %v1169_v10 = vpop.permute.xlu1 %1168 }
 0x1ce   :  { %v1398_v6 = vpop.f32.mrb[0].mxu1  ;;  %v1482_v8 = vpop.f32.mrb[0].mxu0 }
 0x1cf   :  { %v1588_v9 = vadd.f32 %v1398_v6, %v230_v61  ;;  %v677_v13 = vpop.f32.mrb[1].mxu1  ;;  %v1079_v15 = vpop.f32.mrb[1].mxu0 }
 0x1d0   :  { %v1590_v19 = vadd.f32 %v677_v13, %v225_v21 }
 0x1d1   :  { %v1589_v31 = vadd.f32 %v1588_v9, %v1482_v8 }
 0x1d2   :  { %v1591_v34 = vadd.f32 %v1590_v19, %v1079_v15  ;;  %v1401_v41 = vpop.f32.mrb[2].mxu1  ;;  %v1485_v45 = vpop.f32.mrb[2].mxu0 }
 0x1d3   :  { %1667 = vtanh.f32 %v1589_v31  ;;  %v1592_v49 = vadd.f32 %v1401_v41, %v240_v38  ;;  %v691_v50 = vpop.f32.mrb[3].mxu1  ;;  %v1091_v53 = vpop.f32.mrb[3].mxu0 }
 0x1d4   :  { %1669 = vtanh.f32 %v1591_v34  ;;  %v1594_v60 = vadd.f32 %v691_v50, %v235_v22  ;;  %v1174_v38 = vpop.permute.xlu0 %1173 }
 0x1d5   :  { %v1593_v62 = vadd.f32 %v1592_v49, %v1485_v45 }
 0x1d6   :  { %v1595_v63 = vadd.f32 %v1594_v60, %v1091_v53  ;;  %v1404_v1 = vpop.f32.mrb[4].mxu1  ;;  %v1488_v2 = vpop.f32.mrb[4].mxu0 }
 0x1d7   :  { %1671 = vtanh.f32 %v1593_v62  ;;  %v1596_v4 = vadd.f32 %v1404_v1, %v250_v0  ;;  %v705_v43 = vpop.f32.mrb[5].mxu1  ;;  %v1103_v51 = vpop.f32.mrb[5].mxu0 }
 0x1d8   :  { %1673 = vtanh.f32 %v1595_v63  ;;  %v1598_v16 = vadd.f32 %v705_v43, %v245_v5  ;;  %v1179_v5 = vpop.permute.xlu1 %1178 }
 0x1d9   :  { %v1597_v17 = vadd.f32 %v1596_v4, %v1488_v2 }
 0x1da   :  { %v1599_v18 = vadd.f32 %v1598_v16, %v1103_v51  ;;  %v1407_v24 = vpop.f32.mrb[6].mxu1  ;;  %v1491_v25 = vpop.f32.mrb[6].mxu0 }
 0x1db   :  { %1675 = vtanh.f32 %v1597_v17  ;;  %v1600_v28 = vadd.f32 %v1407_v24, %v260_v20  ;;  %v719_v27 = vpop.f32.mrb[7].mxu1  ;;  %v1115_v32 = vpop.f32.mrb[7].mxu0 }
 0x1dc   :  { %1677 = vtanh.f32 %v1599_v18  ;;  %v1602_v35 = vadd.f32 %v719_v27, %v255_v23  ;;  %v1206_v23 = vpop.permute.xlu0 %1205 }
 0x1dd   :  { %v1668_v37 = vpop.eup %1667  ;;  %v1601_v42 = vadd.f32 %v1600_v28, %v1491_v25  ;;  %v1211_v34 = vrot.slane %v1206_v23, %v88_v36 }
 0x1de   :  { %v1670_v47 = vpop.eup %1669  ;;  %v1182_v54 = vmul.f32 %v1668_v37, %v1149_v14  ;;  %v1603_v55 = vadd.f32 %v1602_v35, %v1115_v32 }
 0x1df   :  { %v1181_v46 = vmul.f32 %v1670_v47, %v1144_v12  ;;  %1679 = vtanh.f32 %v1601_v42 }
 0x1e0   :  { %1681 = vtanh.f32 %v1603_v55 }
 0x1e1   :  { %v1672_v11 = vpop.eup %1671  ;;  %v1189_v33 = vadd.f32 %v1182_v54, %v1181_v46 }
 0x1e2   :  { %v1674_v39 = vpop.eup %1673  ;;  %v1184_v3 = vmul.f32 %v1672_v11, %v1159_v56 }
 0x1e3   :  { %v1183_v52 = vmul.f32 %v1674_v39, %v1154_v48 }
 0x1e5   :  { %v1676_v59 = vpop.eup %1675  ;;  %v1190_v29 = vadd.f32 %v1189_v33, %v1183_v52 }
 0x1e6   :  { %v1678_v44 = vpop.eup %1677  ;;  %v1186_v26 = vmul.f32 %v1676_v59, %v1169_v10 }
 0x1e7   :  { %v1185_v40 = vmul.f32 %v1678_v44, %v1164_v58  ;;  %v1191_v57 = vadd.f32 %v1190_v29, %v1184_v3 }
 0x1e9   :  { %v1680_v7 = vpop.eup %1679  ;;  %v1192_v21 = vadd.f32 %v1191_v57, %v1185_v40 }
 0x1ea   :  { %v1682_v22 = vpop.eup %1681  ;;  %v1188_v6 = vmul.f32 %v1680_v7, %v1179_v5 }
 0x1eb   :  { %v1187_v61 = vmul.f32 %v1682_v22, %v1174_v38  ;;  %v1193_v0 = vadd.f32 %v1192_v21, %v1186_v26 }
 0x1ed   :  { %v1194_v8 = vadd.f32 %v1193_v0, %v1187_v61 }
 0x1ef   :  { %v1195_v9 = vadd.f32 %v1194_v8, %v1188_v6 }
 0x1f1   :  { %v1196_v13 = vrot.slane %v1195_v9, 4 }
 0x1f3   :  { %v1197_v15 = vadd.f32 %v1196_v13, %v1195_v9 }
 0x1f5   :  { %v1198_v19 = vrot.slane %v1197_v15, 2 }
 0x1f7   :  { %v1199_v20 = vadd.f32 %v1198_v19, %v1197_v15 }
 0x1f9   :  { %v1200_v31 = vrot.slane %v1199_v20, 1 }
 0x1fb   :  { %v1201_v41 = vadd.f32 %v1200_v31, %v1199_v20 }
 0x1fd   :  { %v1212_v45 = vadd.f32 %v1211_v34, %v1201_v41 }
 0x1ff   :  { %1213 = vst [vmem:[#allocation3] sm:$0x1] %v1212_v45 }
 0x200   :  { %1694 = shalt.err (!%p1691_p4)
}
 0x201   :  { %s1695_s4 = scalar_lea.hbm %s2121_s7, 16 }
 0x202   :  { %p1696_p5 = scmp.ne.s32.totalorder %s2121_s7, %s1695_s4  ;;  %p1699_p6 = scmp.lt.u32.totalorder %s1695_s4, %s2121_s7 }
 0x204   :  { %p1701_p7 = pnand %p1699_p6, %p1696_p5 }
 0x206   :  { %1704 = shalt.err (!%p1701_p7)
}
 0x207   :  { %1223 = dma.vmem_to_hbm [thread:$0]  %s1221_s28, 16, %s2121_s7, [#allocation4]  }
 0x208   :  { %1705 = dma.done.wait [#allocation4], 16  }
 0x209   :  { %1706 = vsyncadd [#allocation4], 4294967280 }
 0x20a   :  { %1227 = vsyncpa [#allocation4], 1 }

</bundles_post_ra>
